<compile_context>
chip_gen: v7x
topology: tpu7x:2x2x1
jax: 0.10.0
libtpu: 0.0.40
codegen_flags: <defaults>
</compile_context>

<pallas_src>
import jax
import jax.numpy as jnp
from jax.experimental import pallas as pl
from jax.experimental.pallas import tpu as pltpu

_SUBLANE = 8           # sublane width (second-to-last dim granularity)
_H1, _H2 = 50, 100     # real hidden widths (from the PyTorch module)
_H1P, _H2P = 128, 128  # hidden widths padded to one 128-lane tile


def _round_up(n, m):
    return ((n + m - 1) // m) * m


def _mlp_kernel(x_ref, w1_ref, w2_ref, w3_ref, b_ref, o_ref):
    """Fused 3-layer MLP on one (tb, in_size) batch tile.

    All intermediates stay in VMEM/vregs. Matmuls accumulate in f32 on the
    MXU; bias adds and ReLUs stay f32 (friendly to v5e's f32-only VPU). x is
    cast to the weight dtype here (no-op for f32 params, bf16 MXU path when
    bf16 params are supplied).
    """
    cdt = w1_ref.dtype
    out_cols = o_ref.shape[-1]

    b1 = b_ref[:, :_H1P]                               # (1, 128)
    b2 = b_ref[:, _H1P:_H1P + _H2P]                    # (1, 128)
    b3 = b_ref[:, _H1P + _H2P:_H1P + _H2P + out_cols]  # (1, out)

    x = x_ref[...].astype(cdt)                         # in-kernel cast (bf16 path)
    h1 = jnp.dot(x, w1_ref[...], preferred_element_type=jnp.float32) + b1
    h1 = jnp.maximum(h1, 0.0)
    h2 = jnp.dot(h1.astype(cdt), w2_ref[...],
                 preferred_element_type=jnp.float32) + b2
    h2 = jnp.maximum(h2, 0.0)
    y = jnp.dot(h2.astype(cdt), w3_ref[...],
                preferred_element_type=jnp.float32) + b3
    o_ref[...] = y.astype(o_ref.dtype)


def pad_params(params, compute_dtype=jnp.bfloat16):
    """Pad only the hidden dims (50/100 -> 128); keep in/out dims natural.

    Weights are stored (in, out) -- transposed vs. PyTorch -- and cast to
    `compute_dtype` (bf16 default; pass jnp.float32 for an exact path).
    Biases stay f32 and are concatenated into a single (1, 256 + out) row.
    Zero padding keeps the math exact.
    """
    def pad_cols(a, cols):
        return jnp.pad(a, ((0, 0), (0, cols - a.shape[1])))

    def pad_rows(a, rows):
        return jnp.pad(a, ((0, rows - a.shape[0]), (0, 0)))

    w1 = pad_cols(params["w1"], _H1P).astype(compute_dtype)              # (in, 128)
    w2 = jnp.pad(params["w2"], ((0, _H1P - _H1), (0, _H2P - _H2))
                 ).astype(compute_dtype)                                  # (128, 128)
    w3 = pad_rows(params["w3"], _H2P).astype(compute_dtype)              # (128, out)
    b_cat = jnp.concatenate(
        [pad_cols(params["b1"], _H1P),
         pad_cols(params["b2"], _H2P),
         params["b3"]], axis=1).astype(jnp.float32)                       # (1, 256+out)
    return {"w1": w1, "w2": w2, "w3": w3, "b": b_cat}


def room_controller_net_forward(x, padded_params, *, block_b=1024):
    """x: (B, input_size) f32. padded_params: output of pad_params()."""
    p = padded_params
    B, in_size = x.shape
    assert p["w1"].shape[0] == in_size, "input_size mismatch with params"
    output_size = p["w3"].shape[1]

    # Batch tile: sublane-aligned, big enough to amortize per-step overhead.
    b8 = _round_up(B, _SUBLANE)
    tb = min(_round_up(block_b, _SUBLANE), b8)
    # v7x megacore: if a large batch fits in a single tile, split it into two
    # grid steps so the "parallel" axis can shard across both TensorCores.
    if tb == b8 and b8 >= 512:
        tb = _round_up((b8 + 1) // 2, _SUBLANE)
    b_pad = _round_up(B, tb)
    if b_pad != B:
        x = jnp.pad(x, ((0, b_pad - B), (0, 0)))
    grid = (b_pad // tb,)

    # Advisory cost estimate from the REAL (unpadded) dims.
    w_isz = p["w1"].dtype.itemsize
    real_params = in_size * _H1 + _H1 * _H2 + _H2 * output_size
    flops = 2 * B * real_params
    bytes_accessed = (B * in_size * x.dtype.itemsize
                      + real_params * w_isz
                      + (_H1 + _H2 + output_size) * 4
                      + B * output_size * 4)

    full = lambda a: pl.BlockSpec(a.shape, lambda i: (0, 0))  # VMEM-resident consts

    y = pl.pallas_call(
        _mlp_kernel,
        out_shape=jax.ShapeDtypeStruct((b_pad, output_size), jnp.float32),
        grid=grid,
        in_specs=[
            pl.BlockSpec((tb, in_size), lambda i: (i, 0)),   # x: blocked over batch
            full(p["w1"]), full(p["w2"]), full(p["w3"]), full(p["b"]),
        ],
        out_specs=pl.BlockSpec((tb, output_size), lambda i: (i, 0)),
        compiler_params=pltpu.CompilerParams(
            dimension_semantics=("parallel",)),              # batch across TCs on v7x
        cost_estimate=pl.CostEstimate(
            flops=flops, transcendentals=0, bytes_accessed=bytes_accessed),
    )(x, p["w1"], p["w2"], p["w3"], p["b"])

    return y if b_pad == B else y[:B]


def init_params(key, input_size, output_size):
    """Deterministic synthetic init (PyTorch nn.Linear-style uniform bounds)."""
    def linear(k, fan_in, fan_out):
        k_w, k_b = jax.random.split(k)
        bound = 1.0 / jnp.sqrt(fan_in)
        # stored as (in, out): transpose of PyTorch's (out, in)
        w = jax.random.uniform(k_w, (fan_in, fan_out), jnp.float32, -bound, bound)
        b = jax.random.uniform(k_b, (1, fan_out), jnp.float32, -bound, bound)
        return w, b

    k1, k2, k3 = jax.random.split(key, 3)
    w1, b1 = linear(k1, input_size, _H1)
    w2, b2 = linear(k2, _H1, _H2)
    w3, b3 = linear(k3, _H2, output_size)
    return {"w1": w1, "b1": b1, "w2": w2, "b2": b2, "w3": w3, "b3": b3}


def _reference(x, p):
    h1 = jnp.maximum(x @ p["w1"] + p["b1"], 0.0)
    h2 = jnp.maximum(h1 @ p["w2"] + p["b2"], 0.0)
    return h2 @ p["w3"] + p["b3"]


if __name__ == "__main__":
    input_size = 16
    output_size = 4
    batch = 8

    key = jax.random.PRNGKey(0)
    k_x, k_p = jax.random.split(key)
    x = jax.random.normal(k_x, (batch, input_size), dtype=jnp.float32)
    params = init_params(k_p, input_size, output_size)
    y_ref = _reference(x, params)

    # Exact f32 path (tight tolerance).
    p_f32 = pad_params(params, compute_dtype=jnp.float32)
    y_f32 = jax.block_until_ready(room_controller_net_forward(x, p_f32))
    assert y_f32.shape == (batch, output_size)
    assert jnp.allclose(y_f32, y_ref, atol=1e-5, rtol=1e-5), "f32 mismatch vs reference"

    # Default bf16 weight path (halved weight/activation traffic, bf16 MXU).
    p_bf16 = pad_params(params)  # compute_dtype=jnp.bfloat16
    y_bf16 = jax.block_until_ready(room_controller_net_forward(x, p_bf16))
    assert y_bf16.shape == (batch, output_size)
    assert jnp.allclose(y_bf16, y_ref, atol=5e-2, rtol=5e-2), "bf16 mismatch vs reference"

    print("KERNEL_OK")
</pallas_src>

<mosaic_0001>
module attributes {stable_mosaic.version = 11 : i64} {
  func.func @_mlp_kernel(%arg0: i32, %arg1: memref<8x16xf32, #tpu.memory_space<vmem>>, %arg2: memref<16x128xf32, #tpu.memory_space<vmem>>, %arg3: memref<128x128xf32, #tpu.memory_space<vmem>>, %arg4: memref<128x4xf32, #tpu.memory_space<vmem>>, %arg5: memref<1x260xf32, #tpu.memory_space<vmem>>, %arg6: memref<8x4xf32, #tpu.memory_space<vmem>>) attributes {dimension_semantics = [#tpu.dimension_semantics<parallel>], iteration_bounds = array<i64: 1>, scalar_prefetch = 0 : i64, scratch_operands = 0 : i64, tpu.core_type = #tpu.core_type<tc>, window_params = [{transform_indices = @transform_0, window_bounds = array<i64: 8, 16>}, {pipeline_mode = #tpu.pipeline_mode<synchronous>, transform_indices = @transform_1, window_bounds = array<i64: 16, 128>}, {pipeline_mode = #tpu.pipeline_mode<synchronous>, transform_indices = @transform_2, window_bounds = array<i64: 128, 128>}, {pipeline_mode = #tpu.pipeline_mode<synchronous>, transform_indices = @transform_3, window_bounds = array<i64: 128, 4>}, {pipeline_mode = #tpu.pipeline_mode<synchronous>, transform_indices = @transform_4, window_bounds = array<i64: 1, 260>}, {transform_indices = @transform_5, window_bounds = array<i64: 8, 4>}]} {
    %c0 = arith.constant 0 : index
    %c0_0 = arith.constant 0 : index
    %0 = vector.load %arg5[%c0, %c0_0] : memref<1x260xf32, #tpu.memory_space<vmem>>, vector<1x128xf32>
    %c0_1 = arith.constant 0 : index
    %c128 = arith.constant 128 : index
    %1 = vector.load %arg5[%c0_1, %c128] : memref<1x260xf32, #tpu.memory_space<vmem>>, vector<1x128xf32>
    %c0_2 = arith.constant 0 : index
    %c256 = arith.constant 256 : index
    %2 = vector.load %arg5[%c0_2, %c256] : memref<1x260xf32, #tpu.memory_space<vmem>>, vector<1x4xf32>
    %c0_3 = arith.constant 0 : index
    %c0_4 = arith.constant 0 : index
    %3 = vector.load %arg1[%c0_3, %c0_4] : memref<8x16xf32, #tpu.memory_space<vmem>>, vector<8x16xf32>
    %c0_5 = arith.constant 0 : index
    %c0_6 = arith.constant 0 : index
    %4 = vector.load %arg2[%c0_5, %c0_6] : memref<16x128xf32, #tpu.memory_space<vmem>>, vector<16x128xf32>
    %cst = arith.constant dense<0.000000e+00> : vector<8x128xf32>
    %5 = tpu.matmul %3, %4, %cst {dimension_numbers = #tpu.dot_dimension_numbers<[1], [0], [0], [1], [0, 0, 1, 1], [], []>} : vector<8x16xf32>, vector<16x128xf32>, vector<8x128xf32> -> vector<8x128xf32>
    %6 = vector.broadcast %0 : vector<1x128xf32> to vector<8x128xf32>
    %7 = arith.addf %5, %6 : vector<8x128xf32>
    %cst_7 = arith.constant 0.000000e+00 : f32
    %8 = vector.broadcast %cst_7 : f32 to vector<8x128xf32>
    %9 = arith.maximumf %7, %8 : vector<8x128xf32>
    %c0_8 = arith.constant 0 : index
    %c0_9 = arith.constant 0 : index
    %10 = vector.load %arg3[%c0_8, %c0_9] : memref<128x128xf32, #tpu.memory_space<vmem>>, vector<128x128xf32>
    %cst_10 = arith.constant dense<0.000000e+00> : vector<8x128xf32>
    %11 = tpu.matmul %9, %10, %cst_10 {dimension_numbers = #tpu.dot_dimension_numbers<[1], [0], [0], [1], [0, 0, 1, 1], [], []>} : vector<8x128xf32>, vector<128x128xf32>, vector<8x128xf32> -> vector<8x128xf32>
    %12 = vector.broadcast %1 : vector<1x128xf32> to vector<8x128xf32>
    %13 = arith.addf %11, %12 : vector<8x128xf32>
    %cst_11 = arith.constant 0.000000e+00 : f32
    %14 = vector.broadcast %cst_11 : f32 to vector<8x128xf32>
    %15 = arith.maximumf %13, %14 : vector<8x128xf32>
    %c0_12 = arith.constant 0 : index
    %c0_13 = arith.constant 0 : index
    %16 = vector.load %arg4[%c0_12, %c0_13] : memref<128x4xf32, #tpu.memory_space<vmem>>, vector<128x4xf32>
    %cst_14 = arith.constant dense<0.000000e+00> : vector<8x4xf32>
    %17 = tpu.matmul %15, %16, %cst_14 {dimension_numbers = #tpu.dot_dimension_numbers<[1], [0], [0], [1], [0, 0, 1, 1], [], []>} : vector<8x128xf32>, vector<128x4xf32>, vector<8x4xf32> -> vector<8x4xf32>
    %18 = vector.broadcast %2 : vector<1x4xf32> to vector<8x4xf32>
    %19 = arith.addf %17, %18 : vector<8x4xf32>
    %c0_15 = arith.constant 0 : index
    %c0_16 = arith.constant 0 : index
    %20 = vector.load %arg6[%c0_15, %c0_16] : memref<8x4xf32, #tpu.memory_space<vmem>>, vector<8x4xf32>
    tpu.vector_store %arg6[%c0_15, %c0_16], %19 {strides = array<i32>} : memref<8x4xf32, #tpu.memory_space<vmem>>, vector<8x4xf32>,
    return
  }
  func.func @transform_0(%arg0: i32) -> (i32, i32) {
    %c0_i32 = arith.constant 0 : i32
    %c0_i32_0 = arith.constant 0 : i32
    return %arg0, %c0_i32 : i32, i32
  }
  func.func @transform_1(%arg0: i32) -> (i32, i32) {
    %c0_i32 = arith.constant 0 : i32
    %c0_i32_0 = arith.constant 0 : i32
    %c0_i32_1 = arith.constant 0 : i32
    return %c0_i32, %c0_i32_0 : i32, i32
  }
  func.func @transform_2(%arg0: i32) -> (i32, i32) {
    %c0_i32 = arith.constant 0 : i32
    %c0_i32_0 = arith.constant 0 : i32
    %c0_i32_1 = arith.constant 0 : i32
    return %c0_i32, %c0_i32_0 : i32, i32
  }
  func.func @transform_3(%arg0: i32) -> (i32, i32) {
    %c0_i32 = arith.constant 0 : i32
    %c0_i32_0 = arith.constant 0 : i32
    %c0_i32_1 = arith.constant 0 : i32
    return %c0_i32, %c0_i32_0 : i32, i32
  }
  func.func @transform_4(%arg0: i32) -> (i32, i32) {
    %c0_i32 = arith.constant 0 : i32
    %c0_i32_0 = arith.constant 0 : i32
    %c0_i32_1 = arith.constant 0 : i32
    return %c0_i32, %c0_i32_0 : i32, i32
  }
  func.func @transform_5(%arg0: i32) -> (i32, i32) {
    %c0_i32 = arith.constant 0 : i32
    %c0_i32_0 = arith.constant 0 : i32
    return %arg0, %c0_i32 : i32, i32
  }
}

</mosaic_0001>

<bundles_post_ra>
// kernel: tpu_custom_call.1
= control target key start
LH: loop header
LB: loop body
LE: loop exit
PB: predicated region body
PF: predicated region fallthrough
CT: control target
= control target key end

     0   :  { %10 = vsyncpa [#allocation3], 0  ;;  %s512_s18 = smov [#allocation2]   ;;  %s691_s0 = inlined_call_operand.vmem [shape: f32[8,16], index: 0, kind: input, shape index: {}]   ;;  %s692_s1 = inlined_call_operand.hbm [shape: f32[16,128], index: 1, kind: input, shape index: {}]   ;;  %s693_s2 = inlined_call_operand.vmem [shape: f32[128,128], index: 2, kind: input, shape index: {}]   ;;  %s694_s3 = inlined_call_operand.vmem [shape: f32[128,4], index: 3, kind: input, shape index: {}]   ;;  %s695_s4 = inlined_call_operand.vmem [shape: f32[1,260], index: 4, kind: input, shape index: {}]   ;;  %s696_s5 = inlined_call_operand.vmem [shape: f32[8,4], index: 5, kind: output, shape index: {}]  }
   0x1   :  { %s18_s19 = sshll.u32 %s512_s18, 4  ;;  %s488_s22 = scalar_lea.hbm %s692_s1, 256  ;;  %s19_s19 = int_to_ptr.vmem [resolvable:$true] %s18_s19 }
   0x2   :  { %p489_p0 = scmp.ne.s32.totalorder %s692_s1, %s488_s22  ;;  %p492_p1 = scmp.lt.u32.totalorder %s488_s22, %s692_s1 }
   0x4   :  { %p494_p2 = pnand %p492_p1, %p489_p0 }
   0x6   :  { %497 = shalt.err (!%p494_p2)
}
   0x7   :  { %s498_s27 = scalar_lea.vmem %s19_s19, 256  ;;  %p503_p4 = scmp.lt.s32.totalorder %s19_s19, %s19_s19 }
   0x8   :  { %p499_p3 = scmp.ne.s32.totalorder %s19_s19, %s498_s27  ;;  %p504_p5 = scmp.lt.s32.totalorder %s498_s27, %s498_s27 }
   0xa   :  { %p505_p6 = por %p504_p5, %p503_p4 }
   0xc   :  { %p506_p7 = pnand %p505_p6, %p499_p3 }
   0xe   :  { %509 = shalt.err (!%p506_p7)
}
   0xf   :  { %s513_s28 = smov 128   ;;  %s514_s29 = smov 8  }
  0x10   :  { %24 = dma.hbm_to_vmem [thread:$0]  %s692_s1, 256, %s19_s19, [#allocation3], %s513_s28, %s513_s28, %s514_s29  }
  0x11   :  { %510 = dma.done.wait [#allocation3], 256  }
  0x12   :  { %511 = vsyncadd [#allocation3], 4294967040  ;;  %v515_v0 = vmov 0.0|0.0   ;;  %vm516_vm0 = vmmov 0   ;;  %v517_v1 = vmov 0.0   ;;  %v38_v2 = vld [vmem:[#allocation2] sm:$0xff] }
  0x13   :  { %431 = vmatprep.subr.bf16.mxu0 %v515_v0  ;;  %358 = vmatprep.mubr.msk.f32.mxu0 %vm516_vm0, %v517_v1  ;;  %v39_v3 = vld [vmem:[#allocation2 + $0x8] sm:$0xff]  ;;  %v121_v5 = vld [vmem:[%s693_s2] sm:$0xff]  ;;  %v123_v7 = vld [vmem:[%s693_s2 + $0x10] sm:$0xff]  ;;  %vm46_vm1 = vcmask 130048   ;;  %vm306_vm2 = vcmask 31744  }
  0x14   :  { %434 = vmatprep.subr.bf16.mxu1 %v515_v0  ;;  %393 = vmatprep.mubr.msk.f32.mxu1 %vm516_vm0, %v517_v1  ;;  %v432_v4 = vpack.c.bf16 %v39_v3, %v38_v2  ;;  %v122_v6 = vld [vmem:[%s693_s2 + $0x8] sm:$0xff]  ;;  %v124_v9 = vld [vmem:[%s693_s2 + $0x18] sm:$0xff]  ;;  %v37_v10 = vld [vmem:[%s691_s0] sm:$0xff] }
  0x15   :  { %v435_v8 = vpack.c.bf16 %v122_v6, %v121_v5  ;;  %v438_v11 = vpack.c.bf16 %v124_v9, %v123_v7  ;;  %v125_v12 = vld [vmem:[%s693_s2 + $0x20] sm:$0xff]  ;;  %v126_v13 = vld [vmem:[%s693_s2 + $0x28] sm:$0xff]  ;;  %v127_v15 = vld [vmem:[%s693_s2 + $0x30] sm:$0xff] }
  0x16   :  { %433 = vmatpush3.bf16.msra.mxu0 %v432_v4  ;;  %v441_v14 = vpack.c.bf16 %v126_v13, %v125_v12  ;;  %v128_v16 = vld [vmem:[%s693_s2 + $0x38] sm:$0xff]  ;;  %v129_v18 = vld [vmem:[%s693_s2 + $0x40] sm:$0xff]  ;;  %v130_v19 = vld [vmem:[%s693_s2 + $0x48] sm:$0xff] }
  0x17   :  { %436 = vmatpush3.bf16.msra.mxu1 %v435_v8  ;;  %458 = vmatprep.subr.bf16.mxu0 %v515_v0  ;;  %v444_v17 = vpack.c.bf16 %v128_v16, %v127_v15  ;;  %v447_v20 = vpack.c.bf16 %v130_v19, %v129_v18  ;;  %v131_v21 = vld [vmem:[%s693_s2 + $0x50] sm:$0xff]  ;;  %v132_v22 = vld [vmem:[%s693_s2 + $0x58] sm:$0xff]  ;;  %v133_v24 = vld [vmem:[%s693_s2 + $0x60] sm:$0xff] }
  0x18   :  { %437 = vmatprep.subr.bf16.mxu1 %v515_v0  ;;  %v450_v23 = vpack.c.bf16 %v132_v22, %v131_v21  ;;  %v134_v25 = vld [vmem:[%s693_s2 + $0x68] sm:$0xff]  ;;  %v135_v27 = vld [vmem:[%s693_s2 + $0x70] sm:$0xff]  ;;  %v136_v28 = vld [vmem:[%s693_s2 + $0x78] sm:$0xff] }
  0x19   :  { %359 = vmatmul.mubr.msk.f32.vlgmr.msra.gmra.mrb[0].mxu0 %vm46_vm1, %v37_v10  ;;  %v453_v26 = vpack.c.bf16 %v134_v25, %v133_v24  ;;  %v456_v29 = vpack.c.bf16 %v136_v28, %v135_v27  ;;  %v214_v30 = vld [vmem:[%s694_s3] sm:$0xff]  ;;  %v215_v31 = vld [vmem:[%s694_s3 + $0x8] sm:$0xff]  ;;  %v216_v32 = vld [vmem:[%s694_s3 + $0x10] sm:$0xff] }
  0x1a   :  { %428 = vmatprep.mubr.msk.f32.mxu0 %vm516_vm0, %v517_v1  ;;  %v459_v33 = vpack.c.bf16 %v215_v31, %v214_v30  ;;  %v217_v34 = vld [vmem:[%s694_s3 + $0x18] sm:$0xff]  ;;  %v218_v36 = vld [vmem:[%s694_s3 + $0x20] sm:$0xff]  ;;  %v219_v37 = vld [vmem:[%s694_s3 + $0x28] sm:$0xff] }
  0x1b   :  { %439 = vmatpush3.bf16.msra.mxu1 %v438_v11  ;;  %v462_v35 = vpack.c.bf16 %v217_v34, %v216_v32  ;;  %v465_v38 = vpack.c.bf16 %v219_v37, %v218_v36  ;;  %v220_v39 = vld [vmem:[%s694_s3 + $0x30] sm:$0xff]  ;;  %v221_v40 = vld [vmem:[%s694_s3 + $0x38] sm:$0xff]  ;;  %v222_v42 = vld [vmem:[%s694_s3 + $0x40] sm:$0xff] }
  0x1c   :  { %440 = vmatprep.subr.bf16.mxu1 %v515_v0  ;;  %460 = vmatpush3.bf16.msra.mxu0 %v459_v33  ;;  %v468_v41 = vpack.c.bf16 %v221_v40, %v220_v39  ;;  %v223_v43 = vld [vmem:[%s694_s3 + $0x48] sm:$0xff]  ;;  %v224_v45 = vld [vmem:[%s694_s3 + $0x50] sm:$0xff]  ;;  %v225_v46 = vld [vmem:[%s694_s3 + $0x58] sm:$0xff] }
  0x1d   :  { %461 = vmatprep.subr.bf16.mxu0 %v515_v0  ;;  %v471_v44 = vpack.c.bf16 %v223_v43, %v222_v42  ;;  %v474_v47 = vpack.c.bf16 %v225_v46, %v224_v45  ;;  %v226_v48 = vld [vmem:[%s694_s3 + $0x60] sm:$0xff]  ;;  %v227_v49 = vld [vmem:[%s694_s3 + $0x68] sm:$0xff]  ;;  %v228_v56 = vld [vmem:[%s694_s3 + $0x70] sm:$0xff] }
  0x1e   :  { %v477_v50 = vpack.c.bf16 %v227_v49, %v226_v48  ;;  %v313_v51 = vld [vmem:[%s695_s4] ss:$0 sm:$0xff]  ;;  %v229_v57 = vld [vmem:[%s694_s3 + $0x78] sm:$0xff]  ;;  %v315_v59 = vld [vmem:[%s695_s4 + $0x1] ss:$0 sm:$0xff] }
  0x1f   :  { %442 = vmatpush3.bf16.msra.mxu1 %v441_v14  ;;  %v480_v58 = vpack.c.bf16 %v229_v57, %v228_v56 }
  0x20   :  { %443 = vmatprep.subr.bf16.mxu1 %v515_v0  ;;  %463 = vmatpush3.bf16.msra.mxu0 %v462_v35 }
  0x21   :  { %464 = vmatprep.subr.bf16.mxu0 %v515_v0 }
  0x23   :  { %445 = vmatpush3.bf16.msra.mxu1 %v444_v17 }
  0x24   :  { %446 = vmatprep.subr.bf16.mxu1 %v515_v0  ;;  %466 = vmatpush3.bf16.msra.mxu0 %v465_v38 }
  0x25   :  { %467 = vmatprep.subr.bf16.mxu0 %v515_v0 }
  0x27   :  { %448 = vmatpush3.bf16.msra.mxu1 %v447_v20 }
  0x28   :  { %449 = vmatprep.subr.bf16.mxu1 %v515_v0  ;;  %469 = vmatpush3.bf16.msra.mxu0 %v468_v41 }
  0x29   :  { %470 = vmatprep.subr.bf16.mxu0 %v515_v0 }
  0x2b   :  { %451 = vmatpush3.bf16.msra.mxu1 %v450_v23 }
  0x2c   :  { %452 = vmatprep.subr.bf16.mxu1 %v515_v0  ;;  %472 = vmatpush3.bf16.msra.mxu0 %v471_v44 }
  0x2d   :  { %473 = vmatprep.subr.bf16.mxu0 %v515_v0 }
  0x2f   :  { %454 = vmatpush3.bf16.msra.mxu1 %v453_v26 }
  0x30   :  { %455 = vmatprep.subr.bf16.mxu1 %v515_v0  ;;  %475 = vmatpush3.bf16.msra.mxu0 %v474_v47 }
  0x31   :  { %476 = vmatprep.subr.bf16.mxu0 %v515_v0 }
  0x33   :  { %457 = vmatpush3.bf16.msra.mxu1 %v456_v29 }
  0x34   :  { %478 = vmatpush3.bf16.msra.mxu0 %v477_v50 }
  0x35   :  { %479 = vmatprep.subr.bf16.mxu0 %v515_v0  ;;  %v316_v0 = vld [vmem:[%s695_s4 + $0x2] ss:$0 sm:$0xff] }
  0x38   :  { %481 = vmatpush3.bf16.msra.mxu0 %v480_v58 }
  0xec   :  { %v116_v52 = vpop.f32.mrb[0].mxu0 }
  0xed   :  { %v117_v53 = vadd.f32 %v313_v51, %v116_v52  ;;  %v360_v54 = vpop.f32.mrb[1].mxu0 }
  0xef   :  { %v120_v55 = vmax.f32 %v117_v53, 0.0 }
  0xf1   :  { %394 = vmatmul.mubr.f32.vlgmr.msra.gmra.mrb[0].mxu1 %v120_v55 }
 0x1c4   :  { %v209_v60 = vpop.f32.mrb[0].mxu1 }
 0x1c5   :  { %v210_v61 = vadd.f32 %v315_v59, %v209_v60  ;;  %v395_v62 = vpop.f32.mrb[1].mxu1 }
 0x1c7   :  { %v213_v63 = vmax.f32 %v210_v61, 0.0 }
 0x1c9   :  { %429 = vmatmul.mubr.f32.vlgmr.msra.gmra.mrb[2].mxu0 %v213_v63 }
 0x29c   :  { %v302_v1 = vpop.f32.mrb[2].mxu0 }
 0x29d   :  { %v303_v2 = vadd.f32 %v316_v0, %v302_v1  ;;  %v430_v3 = vpop.f32.mrb[3].mxu0 }
 0x29f   :  { %307 = vst.msk [vmem:[%s696_s5] sm:$0xff] %vm306_vm2, %v303_v2 }
 0x2a0   :  { %312 = vsyncpa [#allocation3], 1 }

</bundles_post_ra>
